<compile_context>
chip_gen: v6e
topology: v6e:2x2x1
jax: 0.10.0
libtpu: 0.0.40
codegen_flags: <defaults>
</compile_context>

<pallas_src>
import jax
import jax.numpy as jnp
import numpy as np
from jax.experimental import pallas as pl
from jax.experimental.pallas import tpu as pltpu

# ---------------- problem sizes (small, consistent with the module) ----------------
BATCH = 8
INPUT_SHAPE = 32          # input_shape
HIDDEN = 16               # hidden_size
COND = 8                  # condition_latent_size
H2 = 2 * HIDDEN           # 2 * hidden_size


# ---------------- Pallas kernel ----------------
def cond_ae_kernel(cond_ref, x_ref,
                   w1_ref, b1_ref, w2_ref, b2_ref,
                   w3_ref, b3_ref, w4_ref, b4_ref,
                   enc_out_ref, rec_out_ref):
    x = x_ref[...]            # (TB, INPUT_SHAPE)
    cond = cond_ref[...]      # (TB, COND)

    # ---- encoder ----
    h1 = jnp.dot(x, w1_ref[...], preferred_element_type=jnp.float32) + b1_ref[...]
    h1 = jnp.maximum(h1, 0.0)                                   # (TB, 2H)
    enc = jnp.dot(h1, w2_ref[...], preferred_element_type=jnp.float32) + b2_ref[...]
    enc = jnp.maximum(enc, 0.0)                                 # (TB, H)

    # ---- encoded_output = concat([cond, enc], axis=1): one lane-concat, one full store
    z = jnp.concatenate([cond, enc], axis=1)                    # (TB, C+H)
    enc_out_ref[...] = z

    # ---- decoder: single matmul on the concatenated activation ----
    h3 = jnp.dot(z, w3_ref[...], preferred_element_type=jnp.float32) + b3_ref[...]
    h3 = jnp.maximum(h3, 0.0)                                   # (TB, 2H)
    rec = jnp.dot(h3, w4_ref[...], preferred_element_type=jnp.float32) + b4_ref[...]
    rec_out_ref[...] = rec                                      # (TB, INPUT_SHAPE)


def conditional_network_forward(cond, x, params, *, batch_tile=128):
    """Returns (encoded_output, reconstructed_output) — same as the torch forward.

    Batch axis is tiled over a 1-D "parallel" grid so large batches pipeline the
    input DMA against compute and use both TensorCores on v7x. Weights stay
    resident in VMEM (constant index_map) across grid steps.
    """
    w1, b1, w2, b2, w3, b3, w4, b4 = params
    B = x.shape[0]
    tb = min(B, batch_tile)
    assert B % tb == 0, "batch must be divisible by the batch tile"
    grid = (B // tb,)

    def batched(feat):
        return pl.BlockSpec((tb, feat), lambda i: (i, 0))

    def whole(arr):
        return pl.BlockSpec(arr.shape, lambda i: (0, 0))

    # Advisory cost hint for XLA's scheduler around the custom call.
    flops = 2 * B * (INPUT_SHAPE * H2 + H2 * HIDDEN + (HIDDEN + COND) * H2 + H2 * INPUT_SHAPE)
    bytes_accessed = 4 * (cond.size + x.size + sum(int(p.size) for p in params)
                          + B * (COND + HIDDEN) + B * INPUT_SHAPE)

    out_shapes = (
        jax.ShapeDtypeStruct((B, COND + HIDDEN), jnp.float32),   # encoded_output
        jax.ShapeDtypeStruct((B, INPUT_SHAPE), jnp.float32),     # reconstructed_output
    )
    # TODO(synk): for maximum store efficiency the outputs (last dims 24 / 32) could be
    # packed lane-dense (multiple rows side-by-side to a 128-multiple last dim) and
    # reshaped in the wrapper; kept in natural layout here to match the module API.
    enc_out, rec_out = pl.pallas_call(
        cond_ae_kernel,
        out_shape=out_shapes,
        grid=grid,
        in_specs=[
            batched(COND), batched(INPUT_SHAPE),
            whole(w1), whole(b1), whole(w2), whole(b2),
            whole(w3), whole(b3), whole(w4), whole(b4),
        ],
        out_specs=(
            batched(COND + HIDDEN),
            batched(INPUT_SHAPE),
        ),
        compiler_params=pltpu.CompilerParams(
            dimension_semantics=("parallel",)),
        cost_estimate=pl.CostEstimate(
            flops=flops, transcendentals=0, bytes_accessed=bytes_accessed),
    )(cond, x, w1, b1, w2, b2, w3, b3, w4, b4)
    return enc_out, rec_out


# ---------------- plain-JAX reference (for sanity check) ----------------
def reference_forward(cond, x, params):
    w1, b1, w2, b2, w3, b3, w4, b4 = params
    h1 = jnp.maximum(x @ w1 + b1, 0.0)
    enc = jnp.maximum(h1 @ w2 + b2, 0.0)
    z = jnp.concatenate([cond, enc], axis=1)
    h3 = jnp.maximum(z @ w3 + b3, 0.0)
    rec = h3 @ w4 + b4
    return z, rec


def make_params(key):
    """Deterministic synthetic parameters (shapes match the torch module's __init__)."""
    ks = jax.random.split(key, 8)

    def lin(kw, fan_in, fan_out):
        # torch Linear default: U(-1/sqrt(fan_in), 1/sqrt(fan_in)); replicated here.
        bound = 1.0 / np.sqrt(fan_in)
        w = jax.random.uniform(kw, (fan_in, fan_out), jnp.float32, -bound, bound)
        b = jax.random.uniform(jax.random.fold_in(kw, 1), (1, fan_out),
                               jnp.float32, -bound, bound)
        return w, b

    w1, b1 = lin(ks[0], INPUT_SHAPE, H2)            # encoder Linear(input, 2H)
    w2, b2 = lin(ks[1], H2, HIDDEN)                 # encoder Linear(2H, H)
    w3, b3 = lin(ks[2], HIDDEN + COND, H2)          # decoder Linear(H+C, 2H)
    w4, b4 = lin(ks[3], H2, INPUT_SHAPE)            # decoder Linear(2H, input)
    return (w1, b1, w2, b2, w3, b3, w4, b4)


if __name__ == "__main__":
    key = jax.random.PRNGKey(0)
    k_cond, k_x, k_p = jax.random.split(key, 3)

    cond = jax.random.uniform(k_cond, (BATCH, COND), jnp.float32)       # condition_latents
    x = jax.random.uniform(k_x, (BATCH, INPUT_SHAPE), jnp.float32)      # current_inputs
    params = make_params(k_p)

    enc_out, rec_out = conditional_network_forward(cond, x, params)
    enc_out, rec_out = jax.block_until_ready((enc_out, rec_out))

    enc_ref, rec_ref = reference_forward(cond, x, params)
    np.testing.assert_allclose(np.asarray(enc_out), np.asarray(enc_ref), rtol=1e-5, atol=1e-5)
    np.testing.assert_allclose(np.asarray(rec_out), np.asarray(rec_ref), rtol=1e-5, atol=1e-5)

    print("KERNEL_OK")
</pallas_src>

<mosaic_0001>
module attributes {stable_mosaic.version = 11 : i64} {
  func.func @cond_ae_kernel(%arg0: i32, %arg1: memref<8x8xf32, #tpu.memory_space<vmem>>, %arg2: memref<8x32xf32, #tpu.memory_space<vmem>>, %arg3: memref<32x32xf32, #tpu.memory_space<vmem>>, %arg4: memref<1x32xf32, #tpu.memory_space<vmem>>, %arg5: memref<32x16xf32, #tpu.memory_space<vmem>>, %arg6: memref<1x16xf32, #tpu.memory_space<vmem>>, %arg7: memref<24x32xf32, #tpu.memory_space<vmem>>, %arg8: memref<1x32xf32, #tpu.memory_space<vmem>>, %arg9: memref<32x32xf32, #tpu.memory_space<vmem>>, %arg10: memref<1x32xf32, #tpu.memory_space<vmem>>, %arg11: memref<8x24xf32, #tpu.memory_space<vmem>>, %arg12: memref<8x32xf32, #tpu.memory_space<vmem>>) attributes {dimension_semantics = [#tpu.dimension_semantics<parallel>], iteration_bounds = array<i64: 1>, scalar_prefetch = 0 : i64, scratch_operands = 0 : i64, tpu.core_type = #tpu.core_type<tc>, window_params = [{transform_indices = @transform_0, window_bounds = array<i64: 8, 8>}, {transform_indices = @transform_1, window_bounds = array<i64: 8, 32>}, {pipeline_mode = #tpu.pipeline_mode<synchronous>, transform_indices = @transform_2, window_bounds = array<i64: 32, 32>}, {pipeline_mode = #tpu.pipeline_mode<synchronous>, transform_indices = @transform_3, window_bounds = array<i64: 1, 32>}, {pipeline_mode = #tpu.pipeline_mode<synchronous>, transform_indices = @transform_4, window_bounds = array<i64: 32, 16>}, {pipeline_mode = #tpu.pipeline_mode<synchronous>, transform_indices = @transform_5, window_bounds = array<i64: 1, 16>}, {pipeline_mode = #tpu.pipeline_mode<synchronous>, transform_indices = @transform_6, window_bounds = array<i64: 24, 32>}, {pipeline_mode = #tpu.pipeline_mode<synchronous>, transform_indices = @transform_7, window_bounds = array<i64: 1, 32>}, {pipeline_mode = #tpu.pipeline_mode<synchronous>, transform_indices = @transform_8, window_bounds = array<i64: 32, 32>}, {pipeline_mode = #tpu.pipeline_mode<synchronous>, transform_indices = @transform_9, window_bounds = array<i64: 1, 32>}, {transform_indices = @transform_10, window_bounds = array<i64: 8, 24>}, {transform_indices = @transform_11, window_bounds = array<i64: 8, 32>}]} {
    %c0 = arith.constant 0 : index
    %c0_0 = arith.constant 0 : index
    %0 = vector.load %arg2[%c0, %c0_0] : memref<8x32xf32, #tpu.memory_space<vmem>>, vector<8x32xf32>
    %c0_1 = arith.constant 0 : index
    %c0_2 = arith.constant 0 : index
    %1 = vector.load %arg1[%c0_1, %c0_2] : memref<8x8xf32, #tpu.memory_space<vmem>>, vector<8x8xf32>
    %c0_3 = arith.constant 0 : index
    %c0_4 = arith.constant 0 : index
    %2 = vector.load %arg3[%c0_3, %c0_4] : memref<32x32xf32, #tpu.memory_space<vmem>>, vector<32x32xf32>
    %cst = arith.constant dense<0.000000e+00> : vector<8x32xf32>
    %3 = tpu.matmul %0, %2, %cst {dimension_numbers = #tpu.dot_dimension_numbers<[1], [0], [0], [1], [0, 0, 1, 1], [], []>} : vector<8x32xf32>, vector<32x32xf32>, vector<8x32xf32> -> vector<8x32xf32>
    %c0_5 = arith.constant 0 : index
    %c0_6 = arith.constant 0 : index
    %4 = vector.load %arg4[%c0_5, %c0_6] : memref<1x32xf32, #tpu.memory_space<vmem>>, vector<1x32xf32>
    %5 = vector.broadcast %4 : vector<1x32xf32> to vector<8x32xf32>
    %6 = arith.addf %3, %5 : vector<8x32xf32>
    %cst_7 = arith.constant 0.000000e+00 : f32
    %7 = vector.broadcast %cst_7 : f32 to vector<8x32xf32>
    %8 = arith.maximumf %6, %7 : vector<8x32xf32>
    %c0_8 = arith.constant 0 : index
    %c0_9 = arith.constant 0 : index
    %9 = vector.load %arg5[%c0_8, %c0_9] : memref<32x16xf32, #tpu.memory_space<vmem>>, vector<32x16xf32>
    %cst_10 = arith.constant dense<0.000000e+00> : vector<8x16xf32>
    %10 = tpu.matmul %8, %9, %cst_10 {dimension_numbers = #tpu.dot_dimension_numbers<[1], [0], [0], [1], [0, 0, 1, 1], [], []>} : vector<8x32xf32>, vector<32x16xf32>, vector<8x16xf32> -> vector<8x16xf32>
    %c0_11 = arith.constant 0 : index
    %c0_12 = arith.constant 0 : index
    %11 = vector.load %arg6[%c0_11, %c0_12] : memref<1x16xf32, #tpu.memory_space<vmem>>, vector<1x16xf32>
    %12 = vector.broadcast %11 : vector<1x16xf32> to vector<8x16xf32>
    %13 = arith.addf %10, %12 : vector<8x16xf32>
    %cst_13 = arith.constant 0.000000e+00 : f32
    %14 = vector.broadcast %cst_13 : f32 to vector<8x16xf32>
    %15 = arith.maximumf %13, %14 : vector<8x16xf32>
    %16 = tpu.concatenate %1, %15 in 1 : vector<8x8xf32>, vector<8x16xf32> -> vector<8x24xf32>
    %c0_14 = arith.constant 0 : index
    %c0_15 = arith.constant 0 : index
    %17 = vector.load %arg11[%c0_14, %c0_15] : memref<8x24xf32, #tpu.memory_space<vmem>>, vector<8x24xf32>
    tpu.vector_store %arg11[%c0_14, %c0_15], %16 {strides = array<i32>} : memref<8x24xf32, #tpu.memory_space<vmem>>, vector<8x24xf32>,
    %c0_16 = arith.constant 0 : index
    %c0_17 = arith.constant 0 : index
    %18 = vector.load %arg7[%c0_16, %c0_17] : memref<24x32xf32, #tpu.memory_space<vmem>>, vector<24x32xf32>
    %cst_18 = arith.constant dense<0.000000e+00> : vector<8x32xf32>
    %19 = tpu.matmul %16, %18, %cst_18 {dimension_numbers = #tpu.dot_dimension_numbers<[1], [0], [0], [1], [0, 0, 1, 1], [], []>} : vector<8x24xf32>, vector<24x32xf32>, vector<8x32xf32> -> vector<8x32xf32>
    %c0_19 = arith.constant 0 : index
    %c0_20 = arith.constant 0 : index
    %20 = vector.load %arg8[%c0_19, %c0_20] : memref<1x32xf32, #tpu.memory_space<vmem>>, vector<1x32xf32>
    %21 = vector.broadcast %20 : vector<1x32xf32> to vector<8x32xf32>
    %22 = arith.addf %19, %21 : vector<8x32xf32>
    %cst_21 = arith.constant 0.000000e+00 : f32
    %23 = vector.broadcast %cst_21 : f32 to vector<8x32xf32>
    %24 = arith.maximumf %22, %23 : vector<8x32xf32>
    %c0_22 = arith.constant 0 : index
    %c0_23 = arith.constant 0 : index
    %25 = vector.load %arg9[%c0_22, %c0_23] : memref<32x32xf32, #tpu.memory_space<vmem>>, vector<32x32xf32>
    %cst_24 = arith.constant dense<0.000000e+00> : vector<8x32xf32>
    %26 = tpu.matmul %24, %25, %cst_24 {dimension_numbers = #tpu.dot_dimension_numbers<[1], [0], [0], [1], [0, 0, 1, 1], [], []>} : vector<8x32xf32>, vector<32x32xf32>, vector<8x32xf32> -> vector<8x32xf32>
    %c0_25 = arith.constant 0 : index
    %c0_26 = arith.constant 0 : index
    %27 = vector.load %arg10[%c0_25, %c0_26] : memref<1x32xf32, #tpu.memory_space<vmem>>, vector<1x32xf32>
    %28 = vector.broadcast %27 : vector<1x32xf32> to vector<8x32xf32>
    %29 = arith.addf %26, %28 : vector<8x32xf32>
    %c0_27 = arith.constant 0 : index
    %c0_28 = arith.constant 0 : index
    %30 = vector.load %arg12[%c0_27, %c0_28] : memref<8x32xf32, #tpu.memory_space<vmem>>, vector<8x32xf32>
    tpu.vector_store %arg12[%c0_27, %c0_28], %29 {strides = array<i32>} : memref<8x32xf32, #tpu.memory_space<vmem>>, vector<8x32xf32>,
    return
  }
  func.func @transform_0(%arg0: i32) -> (i32, i32) {
    %c0_i32 = arith.constant 0 : i32
    %c0_i32_0 = arith.constant 0 : i32
    return %arg0, %c0_i32 : i32, i32
  }
  func.func @transform_1(%arg0: i32) -> (i32, i32) {
    %c0_i32 = arith.constant 0 : i32
    %c0_i32_0 = arith.constant 0 : i32
    return %arg0, %c0_i32 : i32, i32
  }
  func.func @transform_2(%arg0: i32) -> (i32, i32) {
    %c0_i32 = arith.constant 0 : i32
    %c0_i32_0 = arith.constant 0 : i32
    %c0_i32_1 = arith.constant 0 : i32
    return %c0_i32, %c0_i32_0 : i32, i32
  }
  func.func @transform_3(%arg0: i32) -> (i32, i32) {
    %c0_i32 = arith.constant 0 : i32
    %c0_i32_0 = arith.constant 0 : i32
    %c0_i32_1 = arith.constant 0 : i32
    return %c0_i32, %c0_i32_0 : i32, i32
  }
  func.func @transform_4(%arg0: i32) -> (i32, i32) {
    %c0_i32 = arith.constant 0 : i32
    %c0_i32_0 = arith.constant 0 : i32
    %c0_i32_1 = arith.constant 0 : i32
    return %c0_i32, %c0_i32_0 : i32, i32
  }
  func.func @transform_5(%arg0: i32) -> (i32, i32) {
    %c0_i32 = arith.constant 0 : i32
    %c0_i32_0 = arith.constant 0 : i32
    %c0_i32_1 = arith.constant 0 : i32
    return %c0_i32, %c0_i32_0 : i32, i32
  }
  func.func @transform_6(%arg0: i32) -> (i32, i32) {
    %c0_i32 = arith.constant 0 : i32
    %c0_i32_0 = arith.constant 0 : i32
    %c0_i32_1 = arith.constant 0 : i32
    return %c0_i32, %c0_i32_0 : i32, i32
  }
  func.func @transform_7(%arg0: i32) -> (i32, i32) {
    %c0_i32 = arith.constant 0 : i32
    %c0_i32_0 = arith.constant 0 : i32
    %c0_i32_1 = arith.constant 0 : i32
    return %c0_i32, %c0_i32_0 : i32, i32
  }
  func.func @transform_8(%arg0: i32) -> (i32, i32) {
    %c0_i32 = arith.constant 0 : i32
    %c0_i32_0 = arith.constant 0 : i32
    %c0_i32_1 = arith.constant 0 : i32
    return %c0_i32, %c0_i32_0 : i32, i32
  }
  func.func @transform_9(%arg0: i32) -> (i32, i32) {
    %c0_i32 = arith.constant 0 : i32
    %c0_i32_0 = arith.constant 0 : i32
    %c0_i32_1 = arith.constant 0 : i32
    return %c0_i32, %c0_i32_0 : i32, i32
  }
  func.func @transform_10(%arg0: i32) -> (i32, i32) {
    %c0_i32 = arith.constant 0 : i32
    %c0_i32_0 = arith.constant 0 : i32
    return %arg0, %c0_i32 : i32, i32
  }
  func.func @transform_11(%arg0: i32) -> (i32, i32) {
    %c0_i32 = arith.constant 0 : i32
    %c0_i32_0 = arith.constant 0 : i32
    return %arg0, %c0_i32 : i32, i32
  }
}

</mosaic_0001>

<bundles_post_ra>
// kernel: tpu_custom_call.1
= control target key start
LH: loop header
LB: loop body
LE: loop exit
PB: predicated region body
PF: predicated region fallthrough
CT: control target
= control target key end

     0   :  { %17 = vsyncpa [#allocation3], 0  ;;  %s837_s0 = inlined_call_operand.hbm [shape: f32[8,8], index: 0, kind: input, shape index: {}]   ;;  %s838_s1 = inlined_call_operand.hbm [shape: f32[8,32], index: 1, kind: input, shape index: {}]   ;;  %s839_s2 = inlined_call_operand.vmem [shape: f32[32,32], index: 2, kind: input, shape index: {}]   ;;  %s840_s3 = inlined_call_operand.vmem [shape: f32[1,32], index: 3, kind: input, shape index: {}]   ;;  %s841_s4 = inlined_call_operand.vmem [shape: f32[32,16], index: 4, kind: input, shape index: {}]   ;;  %s842_s5 = inlined_call_operand.hbm [shape: f32[1,16], index: 5, kind: input, shape index: {}]   ;;  %s843_s6 = inlined_call_operand.vmem [shape: f32[24,32], index: 6, kind: input, shape index: {}]   ;;  %s844_s7 = inlined_call_operand.vmem [shape: f32[1,32], index: 7, kind: input, shape index: {}]   ;;  %s845_s8 = inlined_call_operand.hbm [shape: f32[32,32], index: 8, kind: input, shape index: {}]   ;;  %s846_s9 = inlined_call_operand.vmem [shape: f32[1,32], index: 9, kind: input, shape index: {}]   ;;  %s847_s10 = inlined_call_operand.hbm [shape: f32[8,24], index: 10, kind: output, shape index: {0}]   ;;  %s848_s11 = inlined_call_operand.hbm [shape: f32[8,32], index: 11, kind: output, shape index: {1}]  }
   0x1   :  { %18 = vsyncpa [#allocation6], 0 }
   0x2   :  { %19 = vsyncpa [#allocation9], 0 }
   0x3   :  { %20 = vsyncpa [#allocation4], 0 }
   0x4   :  { %21 = vsyncpa [#allocation12], 0  ;;  %s678_s17 = smov [#allocation5]   ;;  %s679_s19 = smov [#allocation2]  }
   0x5   :  { %s38_s18 = sshll.u32 %s678_s17, 4  ;;  %s28_s20 = sshll.u32 %s679_s19, 4  ;;  %s39_s18 = int_to_ptr.vmem [resolvable:$true] %s38_s18  ;;  %s29_s20 = int_to_ptr.vmem [resolvable:$true] %s28_s20 }
   0x6   :  { %s556_s21 = scalar_lea.vmem %s39_s18, 128  ;;  %p561_p1 = scmp.lt.s32.totalorder %s39_s18, %s39_s18 }
   0x7   :  { %p557_p0 = scmp.ne.s32.totalorder %s39_s18, %s556_s21  ;;  %p562_p2 = scmp.lt.s32.totalorder %s556_s21, %s556_s21 }
   0x9   :  { %p563_p3 = por %p562_p2, %p561_p1 }
   0xb   :  { %p564_p4 = pnand %p563_p3, %p557_p0 }
   0xd   :  { %567 = shalt.err (!%p564_p4)
}
   0xe   :  { %41 = dma.hbm_to_vmem [thread:$0]  %s838_s1, 128, %s39_s18, [#allocation6]  }
   0xf   :  { %s576_s24 = scalar_lea.vmem %s29_s20, 128  ;;  %p581_p6 = scmp.lt.s32.totalorder %s29_s20, %s29_s20 }
  0x10   :  { %p577_p5 = scmp.ne.s32.totalorder %s29_s20, %s576_s24  ;;  %p582_p7 = scmp.lt.s32.totalorder %s576_s24, %s576_s24 }
  0x12   :  { %p583_p8 = por %p582_p7, %p581_p6 }
  0x14   :  { %p584_p9 = pnand %p583_p8, %p577_p5 }
  0x16   :  { %587 = shalt.err (!%p584_p9)
}
  0x17   :  { %31 = dma.hbm_to_vmem [thread:$0]  %s837_s0, 128, %s29_s20, [#allocation3]  }
  0x18   :  { %s680_s27 = smov [#allocation7]   ;;  %s681_s29 = smov [#allocation8]  }
  0x19   :  { %s54_s28 = sshll.u32 %s680_s27, 4  ;;  %s67_s30 = sshll.u32 %s681_s29, 4  ;;  %s55_s28 = int_to_ptr.vmem [resolvable:$true] %s54_s28  ;;  %s68_s30 = int_to_ptr.vmem [resolvable:$true] %s67_s30 }
  0x1a   :  { %s596_s12 = scalar_lea.vmem %s55_s28, 16  ;;  %s600_s1 = scalar_lea.vmem %s55_s28, 32 }
  0x1b   :  { %p597_p10 = scmp.ne.s32.totalorder %s55_s28, %s596_s12  ;;  %p601_p11 = scmp.lt.s32.totalorder %s55_s28, %s55_s28 }
  0x1c   :  { %p602_p12 = scmp.lt.s32.totalorder %s600_s1, %s596_s12 }
  0x1e   :  { %p603_p13 = por %p602_p12, %p601_p11 }
  0x20   :  { %p604_p0 = pnand %p603_p13, %p597_p10 }
  0x22   :  { %607 = shalt.err (!%p604_p0)
}
  0x23   :  { %57 = dma.hbm_to_vmem [thread:$0]  %s842_s5, 16, %s55_s28, [#allocation6]  }
  0x24   :  { %s616_s15 = scalar_lea.vmem %s68_s30, 512  ;;  %p621_p2 = scmp.lt.s32.totalorder %s68_s30, %s68_s30 }
  0x25   :  { %p617_p1 = scmp.ne.s32.totalorder %s68_s30, %s616_s15  ;;  %p622_p3 = scmp.lt.s32.totalorder %s616_s15, %s616_s15 }
  0x27   :  { %p623_p4 = por %p622_p3, %p621_p2 }
  0x29   :  { %p624_p5 = pnand %p623_p4, %p617_p1 }
  0x2b   :  { %627 = shalt.err (!%p624_p5)
}
  0x2c   :  { %s682_s0 = smov 128   ;;  %s683_s16 = smov 8  }
  0x2d   :  { %73 = dma.hbm_to_vmem [thread:$0]  %s845_s8, 512, %s68_s30, [#allocation9], %s682_s0, %s682_s0, %s683_s16  }
  0x2e   :  { %668 = dma.done.wait [#allocation3], 128  }
  0x2f   :  { %669 = vsyncadd [#allocation3], 4294967168 }
  0x30   :  { %670 = dma.done.wait [#allocation6], 144  }
  0x31   :  { %671 = vsyncadd [#allocation6], 4294967152 }
  0x32   :  { %672 = dma.done.wait [#allocation9], 512  }
  0x33   :  { %673 = vsyncadd [#allocation9], 4294966784  ;;  %v684_v0 = vmov 0.0   ;;  %vm685_vm0 = vmmov 0   ;;  %v93_v1 = vld [vmem:[%s839_s2 + $0x18] sm:$0xff]  ;;  %v92_v2 = vld [vmem:[%s839_s2 + $0x10] sm:$0xff] }
  0x34   :  { %496 = vmatprep.subr.mxu0 %v684_v0  ;;  %504 = vmatprep.mubr.msk.f32.mxu0 %vm685_vm0, %v684_v0  ;;  %v179_v3 = vld [vmem:[%s841_s4 + $0x18] sm:$0xff]  ;;  %v91_v4 = vld [vmem:[%s839_s2 + $0x8] sm:$0xff]  ;;  %v90_v5 = vld [vmem:[%s839_s2] sm:$0xff]  ;;  %vm101_vm1 = vcmask 261120   ;;  %vm265_vm2 = vcmask 64512   ;;  %vm267_vm3 = vcmask 195584  }
  0x35   :  { %507 = vmatprep.subr.mxu1 %v684_v0  ;;  %515 = vmatprep.mubr.msk.f32.mxu1 %vm685_vm0, %v684_v0  ;;  %v88_v6 = vld [vmem:[#allocation5] sm:$0xff]  ;;  %v178_v7 = vld [vmem:[%s841_s4 + $0x10] sm:$0xff]  ;;  %v176_v9 = vld [vmem:[%s841_s4] sm:$0xff] }
  0x36   :  { %497 = vmatpush3.msra.mxu0 %v93_v1  ;;  %508 = vmatpush3.msra.mxu1 %v179_v3  ;;  %v177_v8 = vld [vmem:[%s841_s4 + $0x8] sm:$0xff]  ;;  %v469_v10 = vld [vmem:[%s840_s3] ss:$0 sm:$0xff]  ;;  %v271_v15 = vld [vmem:[%s843_s6 + $0x10] sm:$0xff] }
  0x37   :  { %498 = vmatprep.subr.mxu0 %v684_v0  ;;  %509 = vmatprep.subr.mxu1 %v684_v0  ;;  %v270_v16 = vld [vmem:[%s843_s6 + $0x8] sm:$0xff]  ;;  %v269_v17 = vld [vmem:[%s843_s6] sm:$0xff]  ;;  %v471_v19 = vld [vmem:[#allocation7] ss:$0 sm:$0xff] }
  0x38   :  { %499 = vmatpush3.msra.mxu0 %v92_v2  ;;  %510 = vmatpush3.msra.mxu1 %v178_v7  ;;  %v356_v18 = vld [vmem:[#allocation8 + $0x18] sm:$0xff]  ;;  %v89_v24 = vld [vmem:[#allocation2] sm:$0xff]  ;;  %v353_v29 = vld [vmem:[#allocation8] sm:$0xff] }
  0x39   :  { %500 = vmatprep.subr.mxu0 %v684_v0  ;;  %511 = vmatprep.subr.mxu1 %v684_v0  ;;  %v355_v27 = vld [vmem:[#allocation8 + $0x10] sm:$0xff]  ;;  %v354_v28 = vld [vmem:[#allocation8 + $0x8] sm:$0xff] }
  0x3a   :  { %501 = vmatpush3.msra.mxu0 %v91_v4  ;;  %512 = vmatpush3.msra.mxu1 %v177_v8  ;;  %v473_v30 = vld [vmem:[%s844_s7] ss:$0 sm:$0xff] }
  0x3b   :  { %502 = vmatprep.subr.mxu0 %v684_v0  ;;  %513 = vmatprep.subr.mxu1 %v684_v0 }
  0x3c   :  { %503 = vmatpush3.msra.mxu0 %v90_v5  ;;  %514 = vmatpush3.msra.mxu1 %v176_v9 }
  0x3d   :  { %505 = vmatmul.mubr.msk.f32.vlgmr.msra.gmra.mxu0 %vm101_vm1, %v88_v6  ;;  %518 = vmatprep.subr.mxu0 %v684_v0 }
  0x3e   :  { %524 = vmatprep.mubr.msk.f32.mxu0 %vm685_vm0, %v684_v0  ;;  %527 = vmatprep.subr.mxu1 %v684_v0 }
  0x3f   :  { %519 = vmatpush3.msra.mxu0 %v271_v15 }
  0x40   :  { %520 = vmatprep.subr.mxu0 %v684_v0 }
  0x41   :  { %521 = vmatpush3.msra.mxu0 %v270_v16 }
  0x42   :  { %522 = vmatprep.subr.mxu0 %v684_v0 }
  0x43   :  { %523 = vmatpush3.msra.mxu0 %v269_v17 }
  0xfd   :  { %v171_v11 = vpop.f32.mrf.mxu0 }
  0xfe   :  { %v172_v12 = vadd.f32 %v469_v10, %v171_v11 }
  0xff   :  { %v506_v13 = vpop.f32.mrf.mxu0 }
 0x100   :  { %v175_v14 = vmax.f32 %v172_v12, 0.0 }
 0x102   :  { %516 = vmatmul.mubr.msk.f32.vlgmr.msra.gmra.mxu1 %vm101_vm1, %v175_v14 }
 0x103   :  { %535 = vmatprep.mubr.msk.f32.mxu1 %vm685_vm0, %v684_v0  ;;  %528 = vmatpush3.msra.mxu1 %v356_v18 }
 0x104   :  { %529 = vmatprep.subr.mxu1 %v684_v0 }
 0x105   :  { %530 = vmatpush3.msra.mxu1 %v355_v27 }
 0x106   :  { %531 = vmatprep.subr.mxu1 %v684_v0 }
 0x107   :  { %532 = vmatpush3.msra.mxu1 %v354_v28 }
 0x108   :  { %533 = vmatprep.subr.mxu1 %v684_v0 }
 0x109   :  { %534 = vmatpush3.msra.mxu1 %v353_v29 }
 0x1c2   :  { %v256_v20 = vpop.f32.mrf.mxu1 }
 0x1c3   :  { %v257_v21 = vadd.f32 %v471_v19, %v256_v20 }
 0x1c4   :  { %v517_v22 = vpop.f32.mrf.mxu1 }
 0x1c5   :  { %v260_v23 = vmax.f32 %v257_v21, 0.0 }
 0x1c7   :  { %262 = vrot.lane.b32.xlu0 %v260_v23, %s683_s16  ;;  %s686_s16 = smov [#allocation10]  }
 0x1c8   :  { %s444_s5 = sshll.u32 %s686_s16, 4  ;;  %s445_s5 = int_to_ptr.vmem [resolvable:$true] %s444_s5 }
 0x1c9   :  { %s628_s8 = scalar_lea.vmem %s445_s5, 128  ;;  %p633_p7 = scmp.lt.s32.totalorder %s445_s5, %s445_s5 }
 0x1ca   :  { %p629_p6 = scmp.ne.s32.totalorder %s445_s5, %s628_s8  ;;  %p634_p8 = scmp.lt.s32.totalorder %s628_s8, %s628_s8 }
 0x1cc   :  { %p635_p9 = por %p634_p8, %p633_p7 }
 0x1ce   :  { %p636_p10 = pnand %p635_p9, %p629_p6 }
 0x239   :  { %v263_v25 = vpop.permute.xlu0 %262 }
 0x23a   :  { %v266_v26 = vsel %vm265_vm2, %v89_v24, %v263_v25 }
 0x23b   :  { %525 = vmatmul.mubr.msk.f32.vlgmr.msra.gmra.mxu0 %vm267_vm3, %v266_v26  ;;  %268 = vst.msk [vmem:[#allocation10] sm:$0xff] %vm267_vm3, %v266_v26 }
 0x2fb   :  { %v348_v31 = vpop.f32.mrf.mxu0 }
 0x2fc   :  { %v349_v32 = vadd.f32 %v473_v30, %v348_v31 }
 0x2fd   :  { %v526_v33 = vpop.f32.mrf.mxu0 }
 0x2fe   :  { %v352_v34 = vmax.f32 %v349_v32, 0.0 }
 0x300   :  { %536 = vmatmul.mubr.msk.f32.vlgmr.msra.gmra.mxu1 %vm101_vm1, %v352_v34 }
 0x301   :  { %639 = shalt.err (!%p636_p10)
}
 0x302   :  { %447 = dma.vmem_to_hbm [thread:$0]  %s445_s5, 128, %s847_s10, [#allocation4]   ;;  %v475_v35 = vld [vmem:[%s846_s9] ss:$0 sm:$0xff] }
 0x303   :  { %s687_s22 = smov [#allocation11]  }
 0x304   :  { %s454_s23 = sshll.u32 %s687_s22, 4  ;;  %s455_s23 = int_to_ptr.vmem [resolvable:$true] %s454_s23 }
 0x305   :  { %s648_s24 = scalar_lea.vmem %s455_s23, 128  ;;  %p653_p12 = scmp.lt.s32.totalorder %s455_s23, %s455_s23 }
 0x306   :  { %p649_p11 = scmp.ne.s32.totalorder %s455_s23, %s648_s24  ;;  %p654_p13 = scmp.lt.s32.totalorder %s648_s24, %s648_s24 }
 0x308   :  { %p655_p0 = por %p654_p13, %p653_p12 }
 0x30a   :  { %p656_p1 = pnand %p655_p0, %p649_p11 }
 0x3c0   :  { %v433_v36 = vpop.f32.mrf.mxu1 }
 0x3c1   :  { %v434_v37 = vadd.f32 %v475_v35, %v433_v36 }
 0x3c2   :  { %v537_v38 = vpop.f32.mrf.mxu1 }
 0x3c3   :  { %437 = vst.msk [vmem:[#allocation11] sm:$0xff] %vm101_vm1, %v434_v37 }
 0x3c4   :  { %659 = shalt.err (!%p656_p1)
}
 0x3c5   :  { %457 = dma.vmem_to_hbm [thread:$0]  %s455_s23, 128, %s848_s11, [#allocation12]  }
 0x3c6   :  { %674 = dma.done.wait [#allocation4], 128  }
 0x3c7   :  { %675 = vsyncadd [#allocation4], 4294967168 }
 0x3c8   :  { %676 = dma.done.wait [#allocation12], 128  }
 0x3c9   :  { %677 = vsyncadd [#allocation12], 4294967168 }
 0x3ca   :  { %464 = vsyncpa [#allocation3], 1 }
 0x3cb   :  { %465 = vsyncpa [#allocation6], 1 }
 0x3cc   :  { %466 = vsyncpa [#allocation9], 1 }
 0x3cd   :  { %467 = vsyncpa [#allocation4], 1 }
 0x3ce   :  { %468 = vsyncpa [#allocation12], 1 }

</bundles_post_ra>
